<compile_context>
chip_gen: v7x
topology: tpu7x:2x2x1
jax: 0.10.0
libtpu: 0.0.40
codegen_flags: <defaults>
</compile_context>

<pallas_src>
import functools

import jax
import jax.numpy as jnp
from jax.experimental import pallas as pl
from jax.experimental.pallas import tpu as pltpu


# ----------------------------------------------------------------------------
# Kernel: single invocation, everything resident in VMEM.
# ----------------------------------------------------------------------------
def _cen_kernel(obs_ref, act_ref,
                w1o_ref, w1a_ref, b1_ref,
                w2_ref, b2_ref,
                w3_ref, b3_ref,
                out_ref):
    # Layer 1 (fused over ensemble and C/N pair): [B, 2*E*H]
    h = (jnp.dot(obs_ref[...], w1o_ref[...], preferred_element_type=jnp.float32)
         + jnp.dot(act_ref[...], w1a_ref[...], preferred_element_type=jnp.float32)
         + b1_ref[...])
    h = jnp.maximum(h, 0.0)

    # Layer 2: block-diagonal weight keeps the 2*E groups independent.
    h = jnp.dot(h, w2_ref[...], preferred_element_type=jnp.float32) + b2_ref[...]
    h = jnp.maximum(h, 0.0)

    # Layer 3: packed [2EH, 2O] weight with 1/E folded in -> ensemble means.
    out_ref[...] = (jnp.dot(h, w3_ref[...], preferred_element_type=jnp.float32)
                    + b3_ref[...])


# ----------------------------------------------------------------------------
# Weight packing (raw per-ensemble params -> fused lane-major layout).
# Column order everywhere is (group g, hidden h) with h fastest; groups
# [0, E) are the C-network, groups [E, 2E) are the N-network.
# ----------------------------------------------------------------------------
def _pack_params(params, *, ensemble_size, output_size, obs_dim, act_dim):
    (w1c, b1c, w2c, b2c, w3c, b3c,
     w1n, b1n, w2n, b2n, w3n, b3n) = params
    E, O = ensemble_size, output_size
    H = w1c.shape[-1]
    Dn, Da = obs_dim, act_dim
    f32 = jnp.float32

    def to_cols(w):  # [E, in, H] -> [in, E*H]  (column index = e*H + h)
        return jnp.transpose(w, (1, 0, 2)).reshape(w.shape[1], E * w.shape[2])

    # --- layer 1 ---
    w1o = jnp.concatenate([to_cols(w1c[:, :Dn, :]), to_cols(w1n)], axis=1)   # [Dn, 2EH]
    w1a = jnp.concatenate([to_cols(w1c[:, Dn:, :]),
                           jnp.zeros((Da, E * H), f32)], axis=1)             # [Da, 2EH]
    b1 = jnp.concatenate([b1c.reshape(1, E * H), b1n.reshape(1, E * H)], axis=1)

    # --- layer 2: block-diagonal [2EH, 2EH] ---
    w2_all = jnp.concatenate([w2c, w2n], axis=0)                             # [2E, H, H]
    eye = jnp.eye(2 * E, dtype=f32)
    w2bd = jnp.einsum("gij,gh->gihj", w2_all, eye).reshape(2 * E * H, 2 * E * H)
    b2 = jnp.concatenate([b2c.reshape(1, E * H), b2n.reshape(1, E * H)], axis=1)

    # --- layer 3: [2EH, 2O] with the 1/E ensemble mean folded into the weights ---
    zc = jnp.zeros((E, H, O), f32)
    w3p = jnp.concatenate(
        [jnp.concatenate([w3c, zc], axis=2),      # C groups -> columns [0, O)
         jnp.concatenate([zc, w3n], axis=2)],     # N groups -> columns [O, 2O)
        axis=0).reshape(2 * E * H, 2 * O) * (1.0 / E)
    b3 = jnp.concatenate([jnp.mean(b3c, axis=0),
                          jnp.mean(b3n, axis=0)]).reshape(1, 2 * O)

    return w1o, w1a, b1, w2bd, b2, w3p, b3


# ----------------------------------------------------------------------------
# Wrapper
# ----------------------------------------------------------------------------
def cen_forward(observation, action, params, *, ensemble_size, output_size):
    """Returns (h_a, h_n), each [batch, output_size]: the ensemble means."""
    B, Dn = observation.shape
    Da = action.shape[-1]

    packed = _pack_params(params, ensemble_size=ensemble_size,
                          output_size=output_size, obs_dim=Dn, act_dim=Da)

    vmem = pl.BlockSpec(memory_space=pltpu.MemorySpace.VMEM)
    out = pl.pallas_call(
        _cen_kernel,
        out_shape=jax.ShapeDtypeStruct((B, 2 * output_size), jnp.float32),
        in_specs=[vmem] * (2 + len(packed)),
        out_specs=vmem,
    )(observation, action, *packed)

    return out[:, :output_size], out[:, output_size:]


# ----------------------------------------------------------------------------
# Parameter init (xavier-uniform-like weights, matching Ensemble_FC_Layer
# shapes).  Biases are randomized here (instead of the module's zeros) so the
# correctness check also exercises the bias-packing path.
# ----------------------------------------------------------------------------
def init_params(key, obs_dim, act_dim, hidden, ensemble, out_dim):
    def xavier(k, E, fin, fout):
        # torch.nn.init.xavier_uniform_ on a (E, in, out) tensor uses
        # fan_in = in*out, fan_out = E*out
        rf = fout
        bound = (6.0 / (fin * rf + E * rf)) ** 0.5
        return jax.random.uniform(k, (E, fin, fout), jnp.float32, -bound, bound)

    ks = jax.random.split(key, 12)
    Dc = obs_dim + act_dim
    Dn = obs_dim
    w1c = xavier(ks[0], ensemble, Dc, hidden)
    w2c = xavier(ks[1], ensemble, hidden, hidden)
    w3c = xavier(ks[2], ensemble, hidden, out_dim)
    w1n = xavier(ks[3], ensemble, Dn, hidden)
    w2n = xavier(ks[4], ensemble, hidden, hidden)
    w3n = xavier(ks[5], ensemble, hidden, out_dim)

    def rb(k, n):
        return jax.random.uniform(k, (ensemble, n), jnp.float32, -0.1, 0.1)

    return (w1c, rb(ks[6], hidden), w2c, rb(ks[7], hidden), w3c, rb(ks[8], out_dim),
            w1n, rb(ks[9], hidden), w2n, rb(ks[10], hidden), w3n, rb(ks[11], out_dim))


# ----------------------------------------------------------------------------
# Pure-JAX reference (mirrors the PyTorch forward, deterministic branch)
# ----------------------------------------------------------------------------
def cen_forward_ref(observation, action, params, *, ensemble_size, output_size):
    (w1c, b1c, w2c, b2c, w3c, b3c,
     w1n, b1n, w2n, b2n, w3n, b3n) = params

    def net(x, w1, b1, w2, b2, w3, b3):
        xE = jnp.broadcast_to(x[None], (ensemble_size,) + x.shape)
        h = jax.nn.relu(jnp.einsum("ebi,eio->ebo", xE, w1) + b1[:, None, :])
        h = jax.nn.relu(jnp.einsum("ebi,eio->ebo", h, w2) + b2[:, None, :])
        return jnp.einsum("ebi,eio->ebo", h, w3) + b3[:, None, :]

    xc = jnp.concatenate([observation, action], axis=-1)
    h_a = net(xc, w1c, b1c, w2c, b2c, w3c, b3c).mean(0)
    h_n = net(observation, w1n, b1n, w2n, b2n, w3n, b3n).mean(0)
    return h_a, h_n


if __name__ == "__main__":
    OBS, ACT, HIDDEN, ENSEMBLE, OUT, BATCH = 8, 4, 32, 7, 6, 8

    key = jax.random.PRNGKey(0)
    k_obs, k_act, k_par = jax.random.split(key, 3)
    observation = jax.random.normal(k_obs, (BATCH, OBS), jnp.float32)
    action = jax.random.normal(k_act, (BATCH, ACT), jnp.float32)
    params = init_params(k_par, OBS, ACT, HIDDEN, ENSEMBLE, OUT)

    fwd = jax.jit(functools.partial(cen_forward,
                                    ensemble_size=ENSEMBLE, output_size=OUT))
    h_a, h_n = fwd(observation, action, params)
    jax.block_until_ready((h_a, h_n))

    ra, rn = cen_forward_ref(observation, action, params,
                             ensemble_size=ENSEMBLE, output_size=OUT)
    assert jnp.allclose(h_a, ra, atol=2e-5, rtol=2e-5), "C-network mean mismatch"
    assert jnp.allclose(h_n, rn, atol=2e-5, rtol=2e-5), "N-network mean mismatch"

    print("KERNEL_OK")
</pallas_src>

<mosaic_0001>
module attributes {stable_mosaic.version = 11 : i64} {
  func.func @_cen_kernel(%arg0: memref<8x8xf32, #tpu.memory_space<vmem>>, %arg1: memref<8x4xf32, #tpu.memory_space<vmem>>, %arg2: memref<8x448xf32, #tpu.memory_space<vmem>>, %arg3: memref<4x448xf32, #tpu.memory_space<vmem>>, %arg4: memref<1x448xf32, #tpu.memory_space<vmem>>, %arg5: memref<448x448xf32, #tpu.memory_space<vmem>>, %arg6: memref<1x448xf32, #tpu.memory_space<vmem>>, %arg7: memref<448x12xf32, #tpu.memory_space<vmem>>, %arg8: memref<1x12xf32, #tpu.memory_space<vmem>>, %arg9: memref<8x12xf32, #tpu.memory_space<vmem>>) attributes {dimension_semantics = [], scalar_prefetch = 0 : i64, scratch_operands = 0 : i64, tpu.core_type = #tpu.core_type<tc>} {
    %c0 = arith.constant 0 : index
    %c0_0 = arith.constant 0 : index
    %0 = vector.load %arg0[%c0, %c0_0] : memref<8x8xf32, #tpu.memory_space<vmem>>, vector<8x8xf32>
    %c0_1 = arith.constant 0 : index
    %c0_2 = arith.constant 0 : index
    %1 = vector.load %arg2[%c0_1, %c0_2] : memref<8x448xf32, #tpu.memory_space<vmem>>, vector<8x448xf32>
    %cst = arith.constant dense<0.000000e+00> : vector<8x448xf32>
    %2 = tpu.matmul %0, %1, %cst {dimension_numbers = #tpu.dot_dimension_numbers<[1], [0], [0], [1], [0, 0, 1, 1], [], []>} : vector<8x8xf32>, vector<8x448xf32>, vector<8x448xf32> -> vector<8x448xf32>
    %c0_3 = arith.constant 0 : index
    %c0_4 = arith.constant 0 : index
    %3 = vector.load %arg1[%c0_3, %c0_4] : memref<8x4xf32, #tpu.memory_space<vmem>>, vector<8x4xf32>
    %c0_5 = arith.constant 0 : index
    %c0_6 = arith.constant 0 : index
    %4 = vector.load %arg3[%c0_5, %c0_6] : memref<4x448xf32, #tpu.memory_space<vmem>>, vector<4x448xf32>
    %cst_7 = arith.constant dense<0.000000e+00> : vector<8x448xf32>
    %5 = tpu.matmul %3, %4, %cst_7 {dimension_numbers = #tpu.dot_dimension_numbers<[1], [0], [0], [1], [0, 0, 1, 1], [], []>} : vector<8x4xf32>, vector<4x448xf32>, vector<8x448xf32> -> vector<8x448xf32>
    %6 = arith.addf %2, %5 : vector<8x448xf32>
    %c0_8 = arith.constant 0 : index
    %c0_9 = arith.constant 0 : index
    %7 = vector.load %arg4[%c0_8, %c0_9] : memref<1x448xf32, #tpu.memory_space<vmem>>, vector<1x448xf32>
    %8 = vector.broadcast %7 : vector<1x448xf32> to vector<8x448xf32>
    %9 = arith.addf %6, %8 : vector<8x448xf32>
    %cst_10 = arith.constant 0.000000e+00 : f32
    %10 = vector.broadcast %cst_10 : f32 to vector<8x448xf32>
    %11 = arith.maximumf %9, %10 : vector<8x448xf32>
    %c0_11 = arith.constant 0 : index
    %c0_12 = arith.constant 0 : index
    %12 = vector.load %arg5[%c0_11, %c0_12] : memref<448x448xf32, #tpu.memory_space<vmem>>, vector<448x448xf32>
    %cst_13 = arith.constant dense<0.000000e+00> : vector<8x448xf32>
    %13 = tpu.matmul %11, %12, %cst_13 {dimension_numbers = #tpu.dot_dimension_numbers<[1], [0], [0], [1], [0, 0, 1, 1], [], []>} : vector<8x448xf32>, vector<448x448xf32>, vector<8x448xf32> -> vector<8x448xf32>
    %c0_14 = arith.constant 0 : index
    %c0_15 = arith.constant 0 : index
    %14 = vector.load %arg6[%c0_14, %c0_15] : memref<1x448xf32, #tpu.memory_space<vmem>>, vector<1x448xf32>
    %15 = vector.broadcast %14 : vector<1x448xf32> to vector<8x448xf32>
    %16 = arith.addf %13, %15 : vector<8x448xf32>
    %cst_16 = arith.constant 0.000000e+00 : f32
    %17 = vector.broadcast %cst_16 : f32 to vector<8x448xf32>
    %18 = arith.maximumf %16, %17 : vector<8x448xf32>
    %c0_17 = arith.constant 0 : index
    %c0_18 = arith.constant 0 : index
    %19 = vector.load %arg7[%c0_17, %c0_18] : memref<448x12xf32, #tpu.memory_space<vmem>>, vector<448x12xf32>
    %cst_19 = arith.constant dense<0.000000e+00> : vector<8x12xf32>
    %20 = tpu.matmul %18, %19, %cst_19 {dimension_numbers = #tpu.dot_dimension_numbers<[1], [0], [0], [1], [0, 0, 1, 1], [], []>} : vector<8x448xf32>, vector<448x12xf32>, vector<8x12xf32> -> vector<8x12xf32>
    %c0_20 = arith.constant 0 : index
    %c0_21 = arith.constant 0 : index
    %21 = vector.load %arg8[%c0_20, %c0_21] : memref<1x12xf32, #tpu.memory_space<vmem>>, vector<1x12xf32>
    %22 = vector.broadcast %21 : vector<1x12xf32> to vector<8x12xf32>
    %23 = arith.addf %20, %22 : vector<8x12xf32>
    %c0_22 = arith.constant 0 : index
    %c0_23 = arith.constant 0 : index
    %24 = vector.load %arg9[%c0_22, %c0_23] : memref<8x12xf32, #tpu.memory_space<vmem>>, vector<8x12xf32>
    tpu.vector_store %arg9[%c0_22, %c0_23], %23 {strides = array<i32>} : memref<8x12xf32, #tpu.memory_space<vmem>>, vector<8x12xf32>,
    return
  }
}

</mosaic_0001>

<bundles_post_ra>
// kernel: cen_forward.1
= control target key start
LH: loop header
LB: loop body
LE: loop exit
PB: predicated region body
PF: predicated region fallthrough
CT: control target
= control target key end

     0   :  { %vm48_vm0 = vcmask 1043456   ;;  %v1480_v2 = vmov 0.0   ;;  %vm44_vm1 = vcmask 31744   ;;  %vm199_vm2 = vcmask 64512   ;;  %s2462_s3 = inlined_call_operand.vmem [shape: f32[4,448], index: 3, kind: input, shape index: {}]   ;;  %s2463_s1 = inlined_call_operand.vmem [shape: f32[8,4], index: 1, kind: input, shape index: {}]   ;;  %s2464_s5 = inlined_call_operand.vmem [shape: f32[448,448], index: 5, kind: input, shape index: {}]   ;;  %s2465_s2 = inlined_call_operand.vmem [shape: f32[8,448], index: 2, kind: input, shape index: {}]   ;;  %s2466_s0 = inlined_call_operand.vmem [shape: f32[8,8], index: 0, kind: input, shape index: {}]   ;;  %s2467_s4 = inlined_call_operand.vmem [shape: f32[1,448], index: 4, kind: input, shape index: {}]   ;;  %s2468_s7 = inlined_call_operand.vmem [shape: f32[448,12], index: 7, kind: input, shape index: {}]   ;;  %s2469_s6 = inlined_call_operand.vmem [shape: f32[1,448], index: 6, kind: input, shape index: {}]   ;;  %s2470_s8 = inlined_call_operand.vmem [shape: f32[1,12], index: 8, kind: input, shape index: {}]   ;;  %s2471_s9 = inlined_call_operand.vmem [shape: f32[8,12], index: 9, kind: output, shape index: {}]  }
   0x1   :  { %v38_v0 = vld [vmem:[%s2462_s3] sm:$0xff]  ;;  %v39_v1 = vld [vmem:[%s2462_s3 + $0x8] sm:$0xff]  ;;  %121 = vmatprep.mubr.f32.mxu0 %v1480_v2  ;;  %v378_v6 = vld [vmem:[%s2464_s5 + $0x18] sm:$0xff]  ;;  %vm621_vm3 = vcmask 523264   ;;  %vm1119_vm4 = vcmask 97280  }
   0x2   :  { %v42_v3 = vcombine.high %v38_v0, %v38_v0  ;;  %v43_v4 = vcombine.high %v39_v1, %v39_v1  ;;  %v37_v5 = vld [vmem:[%s2463_s1] sm:$0xff]  ;;  %v382_v7 = vld [vmem:[%s2464_s5 + $0x38] sm:$0xff]  ;;  %v34_v8 = vld [vmem:[%s2465_s2 + $0x8] sm:$0xff] }
   0x3   :  { %v1284_v9 = vpack.c.bf16 %v382_v7, %v378_v6  ;;  %v377_v10 = vld [vmem:[%s2464_s5 + $0x10] sm:$0xff]  ;;  %v33_v12 = vld [vmem:[%s2465_s2] sm:$0xff]  ;;  %v386_v14 = vld [vmem:[%s2464_s5 + $0x58] sm:$0xff] }
   0x4   :  { %1125 = vmatprep.subr.msk.mxu0 %vm48_vm0, %v42_v3  ;;  %v381_v11 = vld [vmem:[%s2464_s5 + $0x30] sm:$0xff]  ;;  %v390_v15 = vld [vmem:[%s2464_s5 + $0x78] sm:$0xff]  ;;  %v376_v20 = vld [vmem:[%s2464_s5 + $0x8] sm:$0xff] }
   0x5   :  { %1126 = vmatpush1.msk.msra.mxu0 %vm48_vm0, %v38_v0  ;;  %v1286_v13 = vpack.c.bf16 %v381_v11, %v377_v10  ;;  %v36_v16 = vld [vmem:[%s2465_s2 + $0x18] sm:$0xff]  ;;  %1285 = vmatprep.subr.bf16.mxu1 %v1284_v9  ;;  %v1288_v17 = vpack.c.bf16 %v390_v15, %v386_v14  ;;  %v385_v18 = vld [vmem:[%s2464_s5 + $0x50] sm:$0xff]  ;;  %v380_v21 = vld [vmem:[%s2464_s5 + $0x28] sm:$0xff] }
   0x6   :  { %1127 = vmatmul.mubr.msk.f32.vlgmr.msra.gmra.mrb[0].mxu0 %vm44_vm1, %v37_v5  ;;  %1128 = vmatprep.subr.msk.mxu0 %vm48_vm0, %v43_v4  ;;  %v389_v19 = vld [vmem:[%s2464_s5 + $0x70] sm:$0xff]  ;;  %v394_v23 = vld [vmem:[%s2464_s5 + $0x98] sm:$0xff]  ;;  %v32_v24 = vld [vmem:[%s2466_s0] sm:$0xff]  ;;  %v1172_v31 = vpack.c.bf16 %v380_v21, %v376_v20 }
   0x7   :  { %1129 = vmatpush1.msk.msra.mxu0 %vm48_vm0, %v39_v1  ;;  %192 = vmatprep.mubr.f32.mxu0 %v1480_v2  ;;  %v1290_v22 = vpack.c.bf16 %v389_v19, %v385_v18  ;;  %v35_v25 = vld [vmem:[%s2465_s2 + $0x10] sm:$0xff]  ;;  %v398_v26 = vld [vmem:[%s2464_s5 + $0xb8] sm:$0xff]  ;;  %v375_v27 = vld [vmem:[%s2464_s5] sm:$0xff] }
   0x8   :  { %203 = vmatprep.subr.mxu0 %v34_v8  ;;  %1287 = vmatpush1.bf16.msra.mxu1 %v1286_v13  ;;  %v1292_v28 = vpack.c.bf16 %v398_v26, %v394_v23  ;;  %v393_v29 = vld [vmem:[%s2464_s5 + $0x90] sm:$0xff]  ;;  %v379_v32 = vld [vmem:[%s2464_s5 + $0x20] sm:$0xff]  ;;  %v402_v33 = vld [vmem:[%s2464_s5 + $0xd8] sm:$0xff] }
   0x9   :  { %1289 = vmatprep.subr.bf16.mxu1 %v1288_v17  ;;  %v397_v30 = vld [vmem:[%s2464_s5 + $0xb0] sm:$0xff]  ;;  %v406_v34 = vld [vmem:[%s2464_s5 + $0xf8] sm:$0xff]  ;;  %v384_v35 = vld [vmem:[%s2464_s5 + $0x48] sm:$0xff]  ;;  %v1174_v41 = vpack.c.bf16 %v379_v32, %v375_v27 }
   0xa   :  { %1130 = vmatmul.mubr.msk.f32.vlgmr.msra.gmra.mrb[2].mxu0 %vm44_vm1, %v37_v5  ;;  %v388_v36 = vld [vmem:[%s2464_s5 + $0x68] sm:$0xff]  ;;  %v1294_v37 = vpack.c.bf16 %v397_v30, %v393_v29  ;;  %v1296_v38 = vpack.c.bf16 %v406_v34, %v402_v33  ;;  %v401_v39 = vld [vmem:[%s2464_s5 + $0xd0] sm:$0xff]  ;;  %v410_v42 = vld [vmem:[%s2464_s5 + $0x118] sm:$0xff] }
   0xb   :  { %204 = vmatpush1.msra.mxu0 %v33_v12  ;;  %267 = vmatprep.mubr.f32.mxu0 %v1480_v2  ;;  %v405_v40 = vld [vmem:[%s2464_s5 + $0xf0] sm:$0xff]  ;;  %v414_v43 = vld [vmem:[%s2464_s5 + $0x138] sm:$0xff]  ;;  %v1176_v44 = vpack.c.bf16 %v388_v36, %v384_v35  ;;  %v383_v45 = vld [vmem:[%s2464_s5 + $0x40] sm:$0xff] }
   0xc   :  { %274 = vmatprep.subr.mxu0 %v36_v16  ;;  %1291 = vmatpush1.bf16.msra.mxu1 %v1290_v22  ;;  %v387_v46 = vld [vmem:[%s2464_s5 + $0x60] sm:$0xff]  ;;  %v392_v47 = vld [vmem:[%s2464_s5 + $0x88] sm:$0xff]  ;;  %v1298_v49 = vpack.c.bf16 %v405_v40, %v401_v39  ;;  %v1300_v50 = vpack.c.bf16 %v414_v43, %v410_v42  ;;  %v409_v51 = vld [vmem:[%s2464_s5 + $0x110] sm:$0xff] }
   0xd   :  { %1293 = vmatprep.subr.bf16.mxu1 %v1292_v28  ;;  %v396_v48 = vld [vmem:[%s2464_s5 + $0xa8] sm:$0xff]  ;;  %v413_v52 = vld [vmem:[%s2464_s5 + $0x130] sm:$0xff]  ;;  %v1178_v53 = vpack.c.bf16 %v387_v46, %v383_v45  ;;  %v418_v54 = vld [vmem:[%s2464_s5 + $0x158] sm:$0xff] }
   0xe   :  { %1131 = vmatmul.mubr.msk.f32.vlgmr.msra.gmra.mrb[0].mxu0 %vm199_vm2, %v32_v24  ;;  %v422_v55 = vld [vmem:[%s2464_s5 + $0x178] sm:$0xff]  ;;  %v1180_v56 = vpack.c.bf16 %v396_v48, %v392_v47  ;;  %v391_v57 = vld [vmem:[%s2464_s5 + $0x80] sm:$0xff]  ;;  %v400_v59 = vld [vmem:[%s2464_s5 + $0xc8] sm:$0xff]  ;;  %v1302_v61 = vpack.c.bf16 %v413_v52, %v409_v51 }
   0xf   :  { %275 = vmatpush1.msra.mxu0 %v35_v25  ;;  %338 = vmatprep.mubr.f32.mxu0 %v1480_v2  ;;  %v395_v58 = vld [vmem:[%s2464_s5 + $0xa0] sm:$0xff]  ;;  %v404_v60 = vld [vmem:[%s2464_s5 + $0xe8] sm:$0xff]  ;;  %v1304_v62 = vpack.c.bf16 %v422_v55, %v418_v54  ;;  %v417_v63 = vld [vmem:[%s2464_s5 + $0x150] sm:$0xff] }
  0x10   :  { %1173 = vmatprep.subr.bf16.mxu0 %v1172_v31  ;;  %1295 = vmatpush1.bf16.msra.mxu1 %v1294_v37  ;;  %v421_v0 = vld [vmem:[%s2464_s5 + $0x170] sm:$0xff]  ;;  %v1182_v1 = vpack.c.bf16 %v395_v58, %v391_v57  ;;  %v426_v2 = vld [vmem:[%s2464_s5 + $0x198] sm:$0xff]  ;;  %v1184_v4 = vpack.c.bf16 %v404_v60, %v400_v59  ;;  %v399_v5 = vld [vmem:[%s2464_s5 + $0xc0] sm:$0xff] }
  0x11   :  { %1297 = vmatprep.subr.bf16.mxu1 %v1296_v38  ;;  %v430_v3 = vld [vmem:[%s2464_s5 + $0x1b8] sm:$0xff]  ;;  %v403_v6 = vld [vmem:[%s2464_s5 + $0xe0] sm:$0xff]  ;;  %v408_v7 = vld [vmem:[%s2464_s5 + $0x108] sm:$0xff]  ;;  %v1306_v9 = vpack.c.bf16 %v421_v0, %v417_v63 }
  0x12   :  { %1132 = vmatmul.mubr.msk.f32.vlgmr.msra.gmra.mrb[2].mxu0 %vm199_vm2, %v32_v24  ;;  %v412_v8 = vld [vmem:[%s2464_s5 + $0x128] sm:$0xff]  ;;  %v1308_v10 = vpack.c.bf16 %v430_v3, %v426_v2  ;;  %v425_v11 = vld [vmem:[%s2464_s5 + $0x190] sm:$0xff]  ;;  %v1186_v13 = vpack.c.bf16 %v403_v6, %v399_v5  ;;  %v434_v14 = vld [vmem:[%s2464_s5 + $0x1d8] sm:$0xff] }
  0x13   :  { %1175 = vmatpush1.bf16.msra.mxu0 %v1174_v41  ;;  %v429_v12 = vld [vmem:[%s2464_s5 + $0x1b0] sm:$0xff]  ;;  %v438_v15 = vld [vmem:[%s2464_s5 + $0x1f8] sm:$0xff]  ;;  %v1188_v16 = vpack.c.bf16 %v412_v8, %v408_v7  ;;  %v407_v17 = vld [vmem:[%s2464_s5 + $0x100] sm:$0xff] }
  0x14   :  { %1177 = vmatprep.subr.bf16.mxu0 %v1176_v44  ;;  %1299 = vmatpush1.bf16.msra.mxu1 %v1298_v49  ;;  %v411_v18 = vld [vmem:[%s2464_s5 + $0x120] sm:$0xff]  ;;  %v416_v19 = vld [vmem:[%s2464_s5 + $0x148] sm:$0xff]  ;;  %v1310_v21 = vpack.c.bf16 %v429_v12, %v425_v11  ;;  %v1312_v22 = vpack.c.bf16 %v438_v15, %v434_v14  ;;  %v433_v23 = vld [vmem:[%s2464_s5 + $0x1d0] sm:$0xff] }
  0x15   :  { %1301 = vmatprep.subr.bf16.mxu1 %v1300_v50  ;;  %v420_v20 = vld [vmem:[%s2464_s5 + $0x168] sm:$0xff]  ;;  %v437_v24 = vld [vmem:[%s2464_s5 + $0x1f0] sm:$0xff]  ;;  %v1190_v25 = vpack.c.bf16 %v411_v18, %v407_v17  ;;  %v442_v26 = vld [vmem:[%s2464_s5 + $0x218] sm:$0xff] }
  0x16   :  { %v446_v27 = vld [vmem:[%s2464_s5 + $0x238] sm:$0xff]  ;;  %v1192_v28 = vpack.c.bf16 %v420_v20, %v416_v19  ;;  %v415_v29 = vld [vmem:[%s2464_s5 + $0x140] sm:$0xff]  ;;  %v424_v31 = vld [vmem:[%s2464_s5 + $0x188] sm:$0xff]  ;;  %v1314_v33 = vpack.c.bf16 %v437_v24, %v433_v23 }
  0x17   :  { %1179 = vmatpush1.bf16.msra.mxu0 %v1178_v53  ;;  %v419_v30 = vld [vmem:[%s2464_s5 + $0x160] sm:$0xff]  ;;  %v428_v32 = vld [vmem:[%s2464_s5 + $0x1a8] sm:$0xff]  ;;  %v1316_v34 = vpack.c.bf16 %v446_v27, %v442_v26  ;;  %v441_v35 = vld [vmem:[%s2464_s5 + $0x210] sm:$0xff] }
  0x18   :  { %1181 = vmatprep.subr.bf16.mxu0 %v1180_v56  ;;  %1303 = vmatpush1.bf16.msra.mxu1 %v1302_v61  ;;  %v445_v36 = vld [vmem:[%s2464_s5 + $0x230] sm:$0xff]  ;;  %v1194_v37 = vpack.c.bf16 %v419_v30, %v415_v29  ;;  %v450_v38 = vld [vmem:[%s2464_s5 + $0x258] sm:$0xff]  ;;  %v1196_v40 = vpack.c.bf16 %v428_v32, %v424_v31  ;;  %v423_v41 = vld [vmem:[%s2464_s5 + $0x180] sm:$0xff] }
  0x19   :  { %1305 = vmatprep.subr.bf16.mxu1 %v1304_v62  ;;  %v454_v39 = vld [vmem:[%s2464_s5 + $0x278] sm:$0xff]  ;;  %v427_v42 = vld [vmem:[%s2464_s5 + $0x1a0] sm:$0xff]  ;;  %v432_v43 = vld [vmem:[%s2464_s5 + $0x1c8] sm:$0xff]  ;;  %v1318_v45 = vpack.c.bf16 %v445_v36, %v441_v35 }
  0x1a   :  { %v436_v44 = vld [vmem:[%s2464_s5 + $0x1e8] sm:$0xff]  ;;  %v1320_v46 = vpack.c.bf16 %v454_v39, %v450_v38  ;;  %v449_v47 = vld [vmem:[%s2464_s5 + $0x250] sm:$0xff]  ;;  %v1198_v49 = vpack.c.bf16 %v427_v42, %v423_v41  ;;  %v458_v50 = vld [vmem:[%s2464_s5 + $0x298] sm:$0xff] }
  0x1b   :  { %1183 = vmatpush1.bf16.msra.mxu0 %v1182_v1  ;;  %v453_v48 = vld [vmem:[%s2464_s5 + $0x270] sm:$0xff]  ;;  %v462_v51 = vld [vmem:[%s2464_s5 + $0x2b8] sm:$0xff]  ;;  %v1200_v52 = vpack.c.bf16 %v436_v44, %v432_v43  ;;  %v431_v53 = vld [vmem:[%s2464_s5 + $0x1c0] sm:$0xff] }
  0x1c   :  { %1185 = vmatprep.subr.bf16.mxu0 %v1184_v4  ;;  %1307 = vmatpush1.bf16.msra.mxu1 %v1306_v9  ;;  %v435_v54 = vld [vmem:[%s2464_s5 + $0x1e0] sm:$0xff]  ;;  %v440_v55 = vld [vmem:[%s2464_s5 + $0x208] sm:$0xff]  ;;  %v1322_v57 = vpack.c.bf16 %v453_v48, %v449_v47  ;;  %v1324_v58 = vpack.c.bf16 %v462_v51, %v458_v50  ;;  %v457_v59 = vld [vmem:[%s2464_s5 + $0x290] sm:$0xff] }
  0x1d   :  { %1309 = vmatprep.subr.bf16.mxu1 %v1308_v10  ;;  %v444_v56 = vld [vmem:[%s2464_s5 + $0x228] sm:$0xff]  ;;  %v461_v60 = vld [vmem:[%s2464_s5 + $0x2b0] sm:$0xff]  ;;  %v1202_v61 = vpack.c.bf16 %v435_v54, %v431_v53  ;;  %v466_v62 = vld [vmem:[%s2464_s5 + $0x2d8] sm:$0xff] }
  0x1e   :  { %v470_v63 = vld [vmem:[%s2464_s5 + $0x2f8] sm:$0xff]  ;;  %v1204_v0 = vpack.c.bf16 %v444_v56, %v440_v55  ;;  %v439_v1 = vld [vmem:[%s2464_s5 + $0x200] sm:$0xff]  ;;  %v448_v3 = vld [vmem:[%s2464_s5 + $0x248] sm:$0xff]  ;;  %v1326_v5 = vpack.c.bf16 %v461_v60, %v457_v59 }
  0x1f   :  { %1187 = vmatpush1.bf16.msra.mxu0 %v1186_v13  ;;  %v443_v2 = vld [vmem:[%s2464_s5 + $0x220] sm:$0xff]  ;;  %v452_v4 = vld [vmem:[%s2464_s5 + $0x268] sm:$0xff]  ;;  %v1328_v6 = vpack.c.bf16 %v470_v63, %v466_v62  ;;  %v465_v7 = vld [vmem:[%s2464_s5 + $0x2d0] sm:$0xff] }
  0x20   :  { %1189 = vmatprep.subr.bf16.mxu0 %v1188_v16  ;;  %1311 = vmatpush1.bf16.msra.mxu1 %v1310_v21  ;;  %v469_v8 = vld [vmem:[%s2464_s5 + $0x2f0] sm:$0xff]  ;;  %v1206_v9 = vpack.c.bf16 %v443_v2, %v439_v1  ;;  %v474_v10 = vld [vmem:[%s2464_s5 + $0x318] sm:$0xff]  ;;  %v1208_v12 = vpack.c.bf16 %v452_v4, %v448_v3  ;;  %v447_v13 = vld [vmem:[%s2464_s5 + $0x240] sm:$0xff] }
  0x21   :  { %1313 = vmatprep.subr.bf16.mxu1 %v1312_v22  ;;  %v478_v11 = vld [vmem:[%s2464_s5 + $0x338] sm:$0xff]  ;;  %v451_v14 = vld [vmem:[%s2464_s5 + $0x260] sm:$0xff]  ;;  %v456_v15 = vld [vmem:[%s2464_s5 + $0x288] sm:$0xff]  ;;  %v1330_v17 = vpack.c.bf16 %v469_v8, %v465_v7 }
  0x22   :  { %v460_v16 = vld [vmem:[%s2464_s5 + $0x2a8] sm:$0xff]  ;;  %v1332_v18 = vpack.c.bf16 %v478_v11, %v474_v10  ;;  %v473_v19 = vld [vmem:[%s2464_s5 + $0x310] sm:$0xff]  ;;  %v1210_v21 = vpack.c.bf16 %v451_v14, %v447_v13  ;;  %v482_v22 = vld [vmem:[%s2464_s5 + $0x358] sm:$0xff] }
  0x23   :  { %1191 = vmatpush1.bf16.msra.mxu0 %v1190_v25  ;;  %v477_v20 = vld [vmem:[%s2464_s5 + $0x330] sm:$0xff]  ;;  %v486_v23 = vld [vmem:[%s2464_s5 + $0x378] sm:$0xff]  ;;  %v1212_v24 = vpack.c.bf16 %v460_v16, %v456_v15  ;;  %v455_v25 = vld [vmem:[%s2464_s5 + $0x280] sm:$0xff] }
  0x24   :  { %1193 = vmatprep.subr.bf16.mxu0 %v1192_v28  ;;  %1315 = vmatpush1.bf16.msra.mxu1 %v1314_v33  ;;  %v459_v26 = vld [vmem:[%s2464_s5 + $0x2a0] sm:$0xff]  ;;  %v464_v27 = vld [vmem:[%s2464_s5 + $0x2c8] sm:$0xff]  ;;  %v1334_v29 = vpack.c.bf16 %v477_v20, %v473_v19  ;;  %v1336_v30 = vpack.c.bf16 %v486_v23, %v482_v22  ;;  %v481_v31 = vld [vmem:[%s2464_s5 + $0x350] sm:$0xff] }
  0x25   :  { %1317 = vmatprep.subr.bf16.mxu1 %v1316_v34  ;;  %v468_v28 = vld [vmem:[%s2464_s5 + $0x2e8] sm:$0xff]  ;;  %v485_v32 = vld [vmem:[%s2464_s5 + $0x370] sm:$0xff]  ;;  %v1214_v33 = vpack.c.bf16 %v459_v26, %v455_v25  ;;  %v490_v34 = vld [vmem:[%s2464_s5 + $0x398] sm:$0xff] }
  0x26   :  { %v494_v35 = vld [vmem:[%s2464_s5 + $0x3b8] sm:$0xff]  ;;  %v1216_v36 = vpack.c.bf16 %v468_v28, %v464_v27  ;;  %v467_v38 = vld [vmem:[%s2464_s5 + $0x2e0] sm:$0xff]  ;;  %v472_v39 = vld [vmem:[%s2464_s5 + $0x308] sm:$0xff]  ;;  %v1338_v41 = vpack.c.bf16 %v485_v32, %v481_v31 }
  0x27   :  { %1195 = vmatpush1.bf16.msra.mxu0 %v1194_v37  ;;  %v463_v37 = vld [vmem:[%s2464_s5 + $0x2c0] sm:$0xff]  ;;  %v1340_v42 = vpack.c.bf16 %v494_v35, %v490_v34  ;;  %v489_v43 = vld [vmem:[%s2464_s5 + $0x390] sm:$0xff]  ;;  %v484_v50 = vld [vmem:[%s2464_s5 + $0x368] sm:$0xff] }
  0x28   :  { %1197 = vmatprep.subr.bf16.mxu0 %v1196_v40  ;;  %1319 = vmatpush1.bf16.msra.mxu1 %v1318_v45  ;;  %v476_v40 = vld [vmem:[%s2464_s5 + $0x328] sm:$0xff]  ;;  %v493_v44 = vld [vmem:[%s2464_s5 + $0x3b0] sm:$0xff]  ;;  %v1218_v45 = vpack.c.bf16 %v467_v38, %v463_v37  ;;  %v471_v47 = vld [vmem:[%s2464_s5 + $0x300] sm:$0xff] }
  0x29   :  { %1321 = vmatprep.subr.bf16.mxu1 %v1320_v46  ;;  %v1220_v46 = vpack.c.bf16 %v476_v40, %v472_v39  ;;  %v475_v48 = vld [vmem:[%s2464_s5 + $0x320] sm:$0xff]  ;;  %v1342_v51 = vpack.c.bf16 %v493_v44, %v489_v43  ;;  %v488_v56 = vld [vmem:[%s2464_s5 + $0x388] sm:$0xff]  ;;  %v498_v1 = vld [vmem:[%s2464_s5 + $0x3d8] sm:$0xff] }
  0x2a   :  { %v479_v54 = vld [vmem:[%s2464_s5 + $0x340] sm:$0xff]  ;;  %v496_v63 = vld [vmem:[%s2464_s5 + $0x3c8] sm:$0xff]  ;;  %v502_v3 = vld [vmem:[%s2464_s5 + $0x3f8] sm:$0xff] }
  0x2b   :  { %1199 = vmatpush1.bf16.msra.mxu0 %v1198_v49  ;;  %v480_v49 = vld [vmem:[%s2464_s5 + $0x348] sm:$0xff]  ;;  %v483_v55 = vld [vmem:[%s2464_s5 + $0x360] sm:$0xff]  ;;  %v497_v8 = vld [vmem:[%s2464_s5 + $0x3d0] sm:$0xff] }
  0x2c   :  { %1201 = vmatprep.subr.bf16.mxu0 %v1200_v52  ;;  %1323 = vmatpush1.bf16.msra.mxu1 %v1322_v57  ;;  %v1222_v52 = vpack.c.bf16 %v475_v48, %v471_v47  ;;  %v1224_v53 = vpack.c.bf16 %v484_v50, %v480_v49  ;;  %v492_v57 = vld [vmem:[%s2464_s5 + $0x3a8] sm:$0xff]  ;;  %v487_v60 = vld [vmem:[%s2464_s5 + $0x380] sm:$0xff]  ;;  %v506_v13 = vld [vmem:[%s2464_s5 + $0x418] sm:$0xff] }
  0x2d   :  { %1325 = vmatprep.subr.bf16.mxu1 %v1324_v58  ;;  %v1226_v58 = vpack.c.bf16 %v483_v55, %v479_v54  ;;  %v1228_v59 = vpack.c.bf16 %v492_v57, %v488_v56  ;;  %v495_v4 = vld [vmem:[%s2464_s5 + $0x3c0] sm:$0xff]  ;;  %v504_v11 = vld [vmem:[%s2464_s5 + $0x408] sm:$0xff]  ;;  %v510_v15 = vld [vmem:[%s2464_s5 + $0x438] sm:$0xff] }
  0x2e   :  { %v1348_v16 = vpack.c.bf16 %v510_v15, %v506_v13  ;;  %v1966_v20 = vld [vmem:[%s2467_s4] sm:$0xf]  ;;  %v509_v31 = vld [vmem:[%s2464_s5 + $0x430] sm:$0xff]  ;;  %v512_v32 = vld [vmem:[%s2464_s5 + $0x448] sm:$0xff] }
  0x2f   :  { %1203 = vmatpush1.bf16.msra.mxu0 %v1202_v61  ;;  %v491_v61 = vld [vmem:[%s2464_s5 + $0x3a0] sm:$0xff]  ;;  %v516_v35 = vld [vmem:[%s2464_s5 + $0x468] sm:$0xff]  ;;  %v518_v37 = vld [vmem:[%s2464_s5 + $0x478] sm:$0xff] }
  0x30   :  { %1205 = vmatprep.subr.bf16.mxu0 %v1204_v0  ;;  %1327 = vmatpush1.bf16.msra.mxu1 %v1326_v5  ;;  %v1230_v62 = vpack.c.bf16 %v491_v61, %v487_v60  ;;  %v500_v0 = vld [vmem:[%s2464_s5 + $0x3e8] sm:$0xff]  ;;  %v499_v5 = vld [vmem:[%s2464_s5 + $0x3e0] sm:$0xff]  ;;  %v513_v48 = vld [vmem:[%s2464_s5 + $0x450] sm:$0xff] }
  0x31   :  { %1329 = vmatprep.subr.bf16.mxu1 %v1328_v6  ;;  %v1232_v2 = vpack.c.bf16 %v500_v0, %v496_v63  ;;  %v1344_v6 = vpack.c.bf16 %v502_v3, %v498_v1  ;;  %v1234_v7 = vpack.c.bf16 %v499_v5, %v495_v4  ;;  %v503_v26 = vld [vmem:[%s2464_s5 + $0x400] sm:$0xff]  ;;  %v517_v49 = vld [vmem:[%s2464_s5 + $0x470] sm:$0xff]  ;;  %v520_v50 = vld [vmem:[%s2464_s5 + $0x488] sm:$0xff] }
  0x32   :  { %v507_v27 = vld [vmem:[%s2464_s5 + $0x420] sm:$0xff]  ;;  %v526_v54 = vld [vmem:[%s2464_s5 + $0x4b8] sm:$0xff]  ;;  %v1354_v57 = vpack.c.bf16 %v517_v49, %v513_v48  ;;  %v525_v63 = vld [vmem:[%s2464_s5 + $0x4b0] sm:$0xff] }
  0x33   :  { %1207 = vmatpush1.bf16.msra.mxu0 %v1206_v9  ;;  %v501_v9 = vld [vmem:[%s2464_s5 + $0x3f0] sm:$0xff]  ;;  %v1238_v40 = vpack.c.bf16 %v507_v27, %v503_v26  ;;  %v515_v43 = vld [vmem:[%s2464_s5 + $0x460] sm:$0xff]  ;;  %v528_v0 = vld [vmem:[%s2464_s5 + $0x4c8] sm:$0xff] }
  0x34   :  { %1209 = vmatprep.subr.bf16.mxu0 %v1208_v12  ;;  %1331 = vmatpush1.bf16.msra.mxu1 %v1330_v17  ;;  %v1346_v10 = vpack.c.bf16 %v501_v9, %v497_v8  ;;  %v508_v12 = vld [vmem:[%s2464_s5 + $0x428] sm:$0xff]  ;;  %v347_v17 = vlaneseq  ;;  %v534_v3 = vld [vmem:[%s2464_s5 + $0x4f8] sm:$0xff]  ;;  %v537_v27 = vld [vmem:[%s2464_s5 + $0x510] sm:$0xff] }
  0x35   :  { %1333 = vmatprep.subr.bf16.mxu1 %v1332_v18  ;;  %v1236_v14 = vpack.c.bf16 %v508_v12, %v504_v11  ;;  %v532_v1 = vld [vmem:[%s2464_s5 + $0x4e8] sm:$0xff]  ;;  %v533_v11 = vld [vmem:[%s2464_s5 + $0x4f0] sm:$0xff]  ;;  %v542_v15 = vld [vmem:[%s2464_s5 + $0x538] sm:$0xff] }
  0x36   :  { %v1960_v18 = vshrl.u32 %v347_v17, 7  ;;  %v1248_v8 = vpack.c.bf16 %v532_v1, %v528_v0  ;;  %v536_v12 = vld [vmem:[%s2464_s5 + $0x508] sm:$0xff]  ;;  %v551_v48 = vld [vmem:[%s2464_s5 + $0x580] sm:$0xff]  ;;  %v561_v0 = vld [vmem:[%s2464_s5 + $0x5d0] sm:$0xff] }
  0x37   :  { %1211 = vmatpush1.bf16.msra.mxu0 %v1210_v21  ;;  %v540_v13 = vld [vmem:[%s2464_s5 + $0x528] sm:$0xff]  ;;  %v555_v49 = vld [vmem:[%s2464_s5 + $0x5a0] sm:$0xff]  ;;  %v565_v1 = vld [vmem:[%s2464_s5 + $0x5f0] sm:$0xff] }
  0x38   :  { %1213 = vmatprep.subr.bf16.mxu0 %v1212_v24  ;;  %1335 = vmatpush1.bf16.msra.mxu1 %v1334_v29  ;;  %v349_v19 = vsub.s32 0, %v1960_v18  ;;  %v353_v21 = vsub.s32 1, %v1960_v18  ;;  %v361_v24 = vsub.s32 3, %v1960_v18 }
  0x39   :  { %1337 = vmatprep.subr.bf16.mxu1 %v1336_v30  ;;  %v505_v30 = vld [vmem:[%s2464_s5 + $0x410] sm:$0xff] }
  0x3a   :  { %v350_v22 = vrot.slane %v1966_v20, %v349_v19  ;;  %v354_v23 = vrot.slane %v1966_v20, %v353_v21  ;;  %v362_v34 = vrot.slane %v1966_v20, %v361_v24 }
  0x3b   :  { %1215 = vmatpush1.bf16.msra.mxu0 %v1214_v33 }
  0x3c   :  { %1217 = vmatprep.subr.bf16.mxu0 %v1216_v36  ;;  %1339 = vmatpush1.bf16.msra.mxu1 %v1338_v41  ;;  %v514_v36 = vld [vmem:[%s2464_s5 + $0x458] sm:$0xff]  ;;  %v1350_v41 = vpack.c.bf16 %v509_v31, %v505_v30  ;;  %v548_v30 = vld [vmem:[%s2464_s5 + $0x568] sm:$0xff] }
  0x3d   :  { %1341 = vmatprep.subr.bf16.mxu1 %v1340_v42  ;;  %v511_v42 = vld [vmem:[%s2464_s5 + $0x440] sm:$0xff]  ;;  %v1352_v47 = vpack.c.bf16 %v518_v37, %v514_v36  ;;  %v546_v31 = vld [vmem:[%s2464_s5 + $0x558] sm:$0xff] }
  0x3e   :  { %v1242_v56 = vpack.c.bf16 %v515_v43, %v511_v42  ;;  %v547_v36 = vld [vmem:[%s2464_s5 + $0x560] sm:$0xff]  ;;  %v552_v42 = vld [vmem:[%s2464_s5 + $0x588] sm:$0xff] }
  0x3f   :  { %1219 = vmatpush1.bf16.msra.mxu0 %v1218_v45  ;;  %v556_v43 = vld [vmem:[%s2464_s5 + $0x5a8] sm:$0xff] }
  0x40   :  { %1221 = vmatprep.subr.bf16.mxu0 %v1220_v46  ;;  %1343 = vmatpush1.bf16.msra.mxu1 %v1342_v51  ;;  %v1240_v46 = vpack.c.bf16 %v516_v35, %v512_v32  ;;  %v550_v32 = vld [vmem:[%s2464_s5 + $0x578] sm:$0xff]  ;;  %v543_v35 = vld [vmem:[%s2464_s5 + $0x540] sm:$0xff] }
  0x41   :  { %1345 = vmatprep.subr.bf16.mxu1 %v1344_v6  ;;  %v527_v6 = vld [vmem:[%s2464_s5 + $0x4c0] sm:$0xff] }
  0x43   :  { %1223 = vmatpush1.bf16.msra.mxu0 %v1222_v52  ;;  %v524_v52 = vld [vmem:[%s2464_s5 + $0x4a8] sm:$0xff] }
  0x44   :  { %1225 = vmatprep.subr.bf16.mxu0 %v1224_v53  ;;  %1347 = vmatpush1.bf16.msra.mxu1 %v1346_v10  ;;  %v522_v53 = vld [vmem:[%s2464_s5 + $0x498] sm:$0xff]  ;;  %v1244_v60 = vpack.c.bf16 %v524_v52, %v520_v50  ;;  %v529_v10 = vld [vmem:[%s2464_s5 + $0x4d0] sm:$0xff]  ;;  %v1260_v50 = vpack.c.bf16 %v556_v43, %v552_v42 }
  0x45   :  { %1349 = vmatprep.subr.bf16.mxu1 %v1348_v16  ;;  %v1356_v61 = vpack.c.bf16 %v526_v54, %v522_v53  ;;  %v1362_v17 = vpack.c.bf16 %v533_v11, %v529_v10  ;;  %v553_v52 = vld [vmem:[%s2464_s5 + $0x590] sm:$0xff]  ;;  %v560_v54 = vld [vmem:[%s2464_s5 + $0x5c8] sm:$0xff] }
  0x46   :  { %v557_v53 = vld [vmem:[%s2464_s5 + $0x5b0] sm:$0xff] }
  0x47   :  { %1227 = vmatpush1.bf16.msra.mxu0 %v1226_v58  ;;  %v519_v58 = vld [vmem:[%s2464_s5 + $0x480] sm:$0xff]  ;;  %v585_v43 = vld [vmem:[%s2464_s5 + $0x690] sm:$0xff] }
  0x48   :  { %1229 = vmatprep.subr.bf16.mxu0 %v1228_v59  ;;  %v523_v59 = vld [vmem:[%s2464_s5 + $0x4a0] sm:$0xff] }
  0x49   :  { %v1246_v4 = vpack.c.bf16 %v523_v59, %v519_v58  ;;  %v1262_v58 = vpack.c.bf16 %v555_v49, %v551_v48  ;;  %v1374_v59 = vpack.c.bf16 %v557_v53, %v553_v52  ;;  %v598_v48 = vld [vmem:[%s2464_s5 + $0x6f8] sm:$0xff] }
  0x4b   :  { %1231 = vmatpush1.bf16.msra.mxu0 %v1230_v62  ;;  %v521_v62 = vld [vmem:[%s2464_s5 + $0x490] sm:$0xff] }
  0x4c   :  { %1233 = vmatprep.subr.bf16.mxu0 %v1232_v2  ;;  %v530_v2 = vld [vmem:[%s2464_s5 + $0x4d8] sm:$0xff]  ;;  %v1358_v5 = vpack.c.bf16 %v525_v63, %v521_v62 }
  0x4d   :  { %v1360_v9 = vpack.c.bf16 %v534_v3, %v530_v2  ;;  %v568_v2 = vld [vmem:[%s2464_s5 + $0x608] sm:$0xff] }
  0x4e   :  { %v572_v3 = vld [vmem:[%s2464_s5 + $0x628] sm:$0xff] }
  0x4f   :  { %1235 = vmatpush1.bf16.msra.mxu0 %v1234_v7  ;;  %v531_v7 = vld [vmem:[%s2464_s5 + $0x4e0] sm:$0xff]  ;;  %v1268_v10 = vpack.c.bf16 %v572_v3, %v568_v2  ;;  %v914_v2 = vld [vmem:[%s2468_s7 + $0x8] sm:$0xff]  ;;  %v931_v3 = vld [vmem:[%s2468_s7 + $0x90] sm:$0xff] }
  0x50   :  { %1237 = vmatprep.subr.bf16.mxu0 %v1236_v14  ;;  %v538_v14 = vld [vmem:[%s2464_s5 + $0x518] sm:$0xff]  ;;  %v1250_v16 = vpack.c.bf16 %v531_v7, %v527_v6  ;;  %v1378_v7 = vpack.c.bf16 %v565_v1, %v561_v0  ;;  %v913_v1 = vld [vmem:[%s2468_s7] sm:$0xff] }
  0x51   :  { %v1364_v26 = vpack.c.bf16 %v542_v15, %v538_v14  ;;  %v576_v14 = vld [vmem:[%s2464_s5 + $0x648] sm:$0xff] }
  0x52   :  { %v580_v15 = vld [vmem:[%s2464_s5 + $0x668] sm:$0xff] }
  0xe1   :  { %v269_v25 = vpop.f32.mrb[0].mxu0 }
  0xe2   :  { %v367_v28 = vadd.f32 %v350_v22, %v269_v25  ;;  %v271_v29 = vpop.f32.mrb[1].mxu0  ;;  %v535_v22 = vld [vmem:[%s2464_s5 + $0x500] sm:$0xff]  ;;  %v1252_v25 = vpack.c.bf16 %v540_v13, %v536_v12  ;;  %v569_v12 = vld [vmem:[%s2464_s5 + $0x610] sm:$0xff] }
  0xe3   :  { %v368_v33 = vadd.f32 %v354_v23, %v271_v29  ;;  %v539_v23 = vld [vmem:[%s2464_s5 + $0x520] sm:$0xff]  ;;  %v544_v29 = vld [vmem:[%s2464_s5 + $0x548] sm:$0xff]  ;;  %v573_v13 = vld [vmem:[%s2464_s5 + $0x630] sm:$0xff] }
  0xe4   :  { %v371_v44 = vmax.f32 %v367_v28, 0.0  ;;  %v541_v28 = vld [vmem:[%s2464_s5 + $0x530] sm:$0xff]  ;;  %v1256_v37 = vpack.c.bf16 %v548_v30, %v544_v29 }
  0xe5   :  { %v372_v38 = vmax.f32 %v368_v33, 0.0  ;;  %v2003_v39 = vpop.f32.mrb[2].mxu0  ;;  %v1254_v33 = vpack.c.bf16 %v539_v23, %v535_v22  ;;  %v1382_v23 = vpack.c.bf16 %v573_v13, %v569_v12  ;;  %v577_v29 = vld [vmem:[%s2464_s5 + $0x650] sm:$0xff]  ;;  %v916_v12 = vld [vmem:[%s2468_s7 + $0x18] sm:$0xff]  ;;  %v933_v13 = vld [vmem:[%s2468_s7 + $0xa0] sm:$0xff] }
  0xe6   :  { %v342_v45 = vpop.f32.mrb[3].mxu0  ;;  %v581_v30 = vld [vmem:[%s2464_s5 + $0x670] sm:$0xff] }
  0xe7   :  { %v370_v51 = vadd.f32 %v362_v34, %v342_v45  ;;  %689 = vmatprep.mubr.f32.mxu0 %v372_v38  ;;  %831 = vmatprep.mubr.f32.mxu1 %v372_v38  ;;  %v1366_v34 = vpack.c.bf16 %v541_v28, %v537_v27  ;;  %v1368_v38 = vpack.c.bf16 %v550_v32, %v546_v31  ;;  %v558_v45 = vld [vmem:[%s2464_s5 + $0x5b8] sm:$0xff]  ;;  %v584_v31 = vld [vmem:[%s2464_s5 + $0x688] sm:$0xff] }
  0xe8   :  { %690 = vmatmul.mubr.f32.vlgmr.msra.gmra.mrb[4].mxu0 %v371_v44  ;;  %832 = vmatmul.mubr.f32.vlgmr.msra.gmra.mrb[0].mxu1 %v371_v44  ;;  %v554_v44 = vld [vmem:[%s2464_s5 + $0x598] sm:$0xff]  ;;  %v1272_v27 = vpack.c.bf16 %v580_v15, %v576_v14  ;;  %v588_v32 = vld [vmem:[%s2464_s5 + $0x6a8] sm:$0xff] }
  0xe9   :  { %v374_v55 = vmax.f32 %v370_v51, 0.0  ;;  %1239 = vmatpush1.bf16.msra.mxu0 %v1238_v40  ;;  %1351 = vmatpush1.bf16.msra.mxu1 %v1350_v41  ;;  %v545_v40 = vld [vmem:[%s2464_s5 + $0x550] sm:$0xff]  ;;  %v1372_v51 = vpack.c.bf16 %v558_v45, %v554_v44  ;;  %v592_v45 = vld [vmem:[%s2464_s5 + $0x6c8] sm:$0xff] }
  0xea   :  { %1241 = vmatprep.subr.bf16.mxu0 %v1240_v46  ;;  %1353 = vmatprep.subr.bf16.mxu1 %v1352_v47  ;;  %v549_v41 = vld [vmem:[%s2464_s5 + $0x570] sm:$0xff]  ;;  %v1258_v46 = vpack.c.bf16 %v547_v36, %v543_v35  ;;  %v1386_v36 = vpack.c.bf16 %v581_v30, %v577_v29  ;;  %v934_v14 = vld [vmem:[%s2468_s7 + $0xa8] sm:$0xff] }
  0xeb   :  { %1133 = vmatprep.mubr.msk.f32.mxu0 %vm621_vm3, %v374_v55  ;;  %1134 = vmatprep.mubr.msk.f32.mxu1 %vm621_vm3, %v374_v55  ;;  %v1370_v47 = vpack.c.bf16 %v549_v41, %v545_v40  ;;  %v564_v55 = vld [vmem:[%s2464_s5 + $0x5e8] sm:$0xff]  ;;  %v357_v40 = vsub.s32 2, %v1960_v18  ;;  %v1276_v41 = vpack.c.bf16 %v588_v32, %v584_v31  ;;  %v589_v44 = vld [vmem:[%s2464_s5 + $0x6b0] sm:$0xff]  ;;  %v952_v32 = vld [vmem:[%s2468_s7 + $0x138] sm:$0xff] }
  0xec   :  { %v1264_v62 = vpack.c.bf16 %v564_v55, %v560_v54  ;;  %v595_v55 = vld [vmem:[%s2464_s5 + $0x6e0] sm:$0xff]  ;;  %v951_v30 = vld [vmem:[%s2468_s7 + $0x130] sm:$0xff] }
  0xed   :  { %1243 = vmatpush1.bf16.msra.mxu0 %v1242_v56  ;;  %1355 = vmatpush1.bf16.msra.mxu1 %v1354_v57  ;;  %v562_v56 = vld [vmem:[%s2464_s5 + $0x5d8] sm:$0xff]  ;;  %v358_v52 = vrot.slane %v1966_v20, %v357_v40  ;;  %v929_v20 = vld [vmem:[%s2468_s7 + $0x80] sm:$0xff] }
  0xee   :  { %1245 = vmatprep.subr.bf16.mxu0 %v1244_v60  ;;  %1357 = vmatprep.subr.bf16.mxu1 %v1356_v61  ;;  %v566_v57 = vld [vmem:[%s2464_s5 + $0x5f8] sm:$0xff]  ;;  %v559_v60 = vld [vmem:[%s2464_s5 + $0x5c0] sm:$0xff] }
  0xef   :  { %v563_v61 = vld [vmem:[%s2464_s5 + $0x5e0] sm:$0xff]  ;;  %v1376_v63 = vpack.c.bf16 %v566_v57, %v562_v56  ;;  %v593_v56 = vld [vmem:[%s2464_s5 + $0x6d0] sm:$0xff] }
  0xf0   :  { %v1266_v6 = vpack.c.bf16 %v563_v61, %v559_v60  ;;  %v597_v57 = vld [vmem:[%s2464_s5 + $0x6f0] sm:$0xff]  ;;  %v945_v61 = vld [vmem:[%s2468_s7 + $0x100] sm:$0xff] }
  0xf1   :  { %1247 = vmatpush1.bf16.msra.mxu0 %v1246_v4  ;;  %1359 = vmatpush1.bf16.msra.mxu1 %v1358_v5  ;;  %v570_v4 = vld [vmem:[%s2464_s5 + $0x618] sm:$0xff]  ;;  %v1394_v60 = vpack.c.bf16 %v597_v57, %v593_v56  ;;  %v941_v56 = vld [vmem:[%s2468_s7 + $0xe0] sm:$0xff]  ;;  %v942_v57 = vld [vmem:[%s2468_s7 + $0xe8] sm:$0xff] }
  0xf2   :  { %1249 = vmatprep.subr.bf16.mxu0 %v1248_v8  ;;  %1361 = vmatprep.subr.bf16.mxu1 %v1360_v9  ;;  %v574_v5 = vld [vmem:[%s2464_s5 + $0x638] sm:$0xff]  ;;  %v567_v8 = vld [vmem:[%s2464_s5 + $0x600] sm:$0xff] }
  0xf3   :  { %v571_v9 = vld [vmem:[%s2464_s5 + $0x620] sm:$0xff]  ;;  %v1380_v11 = vpack.c.bf16 %v574_v5, %v570_v4  ;;  %v947_v5 = vld [vmem:[%s2468_s7 + $0x110] sm:$0xff] }
  0xf4   :  { %v1270_v22 = vpack.c.bf16 %v571_v9, %v567_v8  ;;  %v1481_v8 = vmov 0.0|0.0   ;;  %v948_v9 = vld [vmem:[%s2468_s7 + $0x118] sm:$0xff] }
  0xf5   :  { %1251 = vmatpush1.bf16.msra.mxu0 %v1250_v16  ;;  %1363 = vmatpush1.bf16.msra.mxu1 %v1362_v17  ;;  %v578_v16 = vld [vmem:[%s2464_s5 + $0x658] sm:$0xff]  ;;  %v1432_v15 = vpack.c.bf16 %v948_v9, %v947_v5  ;;  %v926_v9 = vld [vmem:[%s2468_s7 + $0x68] sm:$0xff] }
  0xf6   :  { %1253 = vmatprep.subr.bf16.mxu0 %v1252_v25  ;;  %1365 = vmatprep.subr.bf16.mxu1 %v1364_v26  ;;  %v582_v17 = vld [vmem:[%s2464_s5 + $0x678] sm:$0xff]  ;;  %v575_v25 = vld [vmem:[%s2464_s5 + $0x640] sm:$0xff] }
  0xf7   :  { %v579_v26 = vld [vmem:[%s2464_s5 + $0x660] sm:$0xff]  ;;  %v1384_v28 = vpack.c.bf16 %v582_v17, %v578_v16  ;;  %v964_v5 = vld [vmem:[%s2468_s7 + $0x198] sm:$0xff] }
  0xf8   :  { %v1274_v35 = vpack.c.bf16 %v579_v26, %v575_v25  ;;  %v949_v16 = vld [vmem:[%s2468_s7 + $0x120] sm:$0xff]  ;;  %v918_v26 = vld [vmem:[%s2468_s7 + $0x28] sm:$0xff] }
  0xf9   :  { %1255 = vmatpush1.bf16.msra.mxu0 %v1254_v33  ;;  %1367 = vmatpush1.bf16.msra.mxu1 %v1366_v34  ;;  %v586_v33 = vld [vmem:[%s2464_s5 + $0x698] sm:$0xff]  ;;  %v917_v25 = vld [vmem:[%s2468_s7 + $0x20] sm:$0xff] }
  0xfa   :  { %1257 = vmatprep.subr.bf16.mxu0 %v1256_v37  ;;  %1369 = vmatprep.subr.bf16.mxu1 %v1368_v38  ;;  %v590_v34 = vld [vmem:[%s2464_s5 + $0x6b8] sm:$0xff]  ;;  %v583_v37 = vld [vmem:[%s2464_s5 + $0x680] sm:$0xff]  ;;  %v1406_v31 = vpack.c.bf16 %v918_v26, %v917_v25 }
  0xfb   :  { %v587_v38 = vld [vmem:[%s2464_s5 + $0x6a0] sm:$0xff]  ;;  %v1388_v42 = vpack.c.bf16 %v590_v34, %v586_v33  ;;  %v919_v34 = vld [vmem:[%s2468_s7 + $0x30] sm:$0xff]  ;;  %v968_v26 = vld [vmem:[%s2468_s7 + $0x1b8] sm:$0xff] }
  0xfc   :  { %v1278_v49 = vpack.c.bf16 %v587_v38, %v583_v37  ;;  %v938_v37 = vld [vmem:[%s2468_s7 + $0xc8] sm:$0xff]  ;;  %v1438_v38 = vpack.c.bf16 %v952_v32, %v951_v30 }
  0xfd   :  { %1259 = vmatpush1.bf16.msra.mxu0 %v1258_v46  ;;  %1371 = vmatpush1.bf16.msra.mxu1 %v1370_v47  ;;  %v596_v46 = vld [vmem:[%s2464_s5 + $0x6e8] sm:$0xff]  ;;  %v594_v47 = vld [vmem:[%s2464_s5 + $0x6d8] sm:$0xff] }
  0xfe   :  { %1261 = vmatprep.subr.bf16.mxu0 %v1260_v50  ;;  %1373 = vmatprep.subr.bf16.mxu1 %v1372_v51  ;;  %v1390_v50 = vpack.c.bf16 %v589_v44, %v585_v43  ;;  %v591_v51 = vld [vmem:[%s2464_s5 + $0x6c0] sm:$0xff]  ;;  %v1280_v53 = vpack.c.bf16 %v596_v46, %v592_v45  ;;  %v1392_v54 = vpack.c.bf16 %v598_v48, %v594_v47  ;;  %v954_v43 = vld [vmem:[%s2468_s7 + $0x148] sm:$0xff]  ;;  %v939_v47 = vld [vmem:[%s2468_s7 + $0xd0] sm:$0xff] }
  0xff   :  { %v921_v45 = vld [vmem:[%s2468_s7 + $0x40] sm:$0xff]  ;;  %v922_v46 = vld [vmem:[%s2468_s7 + $0x48] sm:$0xff]  ;;  %v940_v48 = vld [vmem:[%s2468_s7 + $0xd8] sm:$0xff] }
 0x101   :  { %1263 = vmatpush1.bf16.msra.mxu0 %v1262_v58  ;;  %1375 = vmatpush1.bf16.msra.mxu1 %v1374_v59  ;;  %v930_v58 = vld [vmem:[%s2468_s7 + $0x88] sm:$0xff]  ;;  %v1282_v59 = vpack.c.bf16 %v595_v55, %v591_v51  ;;  %v1414_v51 = vpack.c.bf16 %v922_v46, %v921_v45  ;;  %v924_v55 = vld [vmem:[%s2468_s7 + $0x58] sm:$0xff] }
 0x102   :  { %1265 = vmatprep.subr.bf16.mxu0 %v1264_v62  ;;  %1377 = vmatprep.subr.bf16.mxu1 %v1376_v63  ;;  %v369_v62 = vadd.f32 %v358_v52, %v2003_v39  ;;  %v946_v63 = vld [vmem:[%s2468_s7 + $0x108] sm:$0xff]  ;;  %v1396_v0 = vpack.c.bf16 %v930_v58, %v929_v20  ;;  %v932_v39 = vld [vmem:[%s2468_s7 + $0x98] sm:$0xff] }
 0x103   :  { %v1429_v4 = vpack.c.bf16 %v946_v63, %v945_v61  ;;  %v956_v52 = vld [vmem:[%s2468_s7 + $0x158] sm:$0xff]  ;;  %v1420_v61 = vpack.c.bf16 %v942_v57, %v941_v56  ;;  %v959_v63 = vld [vmem:[%s2468_s7 + $0x170] sm:$0xff] }
 0x105   :  { %1267 = vmatpush1.bf16.msra.mxu0 %v1266_v6  ;;  %1379 = vmatpush1.bf16.msra.mxu1 %v1378_v7  ;;  %v1398_v6 = vpack.c.bf16 %v914_v2, %v913_v1  ;;  %v373_v7 = vmax.f32 %v369_v62, 0.0  ;;  %v961_v2 = vld [vmem:[%s2468_s7 + $0x180] sm:$0xff] }
 0x106   :  { %1269 = vmatprep.subr.bf16.mxu0 %v1268_v10  ;;  %1381 = vmatprep.subr.bf16.mxu1 %v1380_v11  ;;  %v1400_v10 = vpack.c.bf16 %v932_v39, %v931_v3  ;;  %v915_v11 = vld [vmem:[%s2468_s7 + $0x10] sm:$0xff]  ;;  %v962_v3 = vld [vmem:[%s2468_s7 + $0x188] sm:$0xff] }
 0x107   :  { %v1402_v17 = vpack.c.bf16 %v916_v12, %v915_v11  ;;  %v1453_v39 = vpack.c.bf16 %v962_v3, %v961_v2  ;;  %v966_v12 = vld [vmem:[%s2468_s7 + $0x1a8] sm:$0xff] }
 0x109   :  { %1271 = vmatpush1.bf16.msra.mxu0 %v1270_v22  ;;  %1383 = vmatpush1.bf16.msra.mxu1 %v1382_v23  ;;  %v950_v22 = vld [vmem:[%s2468_s7 + $0x128] sm:$0xff]  ;;  %v1404_v23 = vpack.c.bf16 %v934_v14, %v933_v13  ;;  %v943_v14 = vld [vmem:[%s2468_s7 + $0xf0] sm:$0xff] }
 0x10a   :  { %1273 = vmatprep.subr.bf16.mxu0 %v1272_v27  ;;  %1385 = vmatprep.subr.bf16.mxu1 %v1384_v28  ;;  %v935_v27 = vld [vmem:[%s2468_s7 + $0xb0] sm:$0xff]  ;;  %v936_v28 = vld [vmem:[%s2468_s7 + $0xb8] sm:$0xff]  ;;  %v1435_v29 = vpack.c.bf16 %v950_v22, %v949_v16 }
 0x10b   :  { %v1408_v33 = vpack.c.bf16 %v936_v28, %v935_v27  ;;  %v928_v22 = vld [vmem:[%s2468_s7 + $0x78] sm:$0xff]  ;;  %v599_v28 = vld [vmem:[%s2469_s6] sm:$0xf] }
 0x10c   :  { %v612_v30 = vrot.slane %v599_v28, %v357_v40 }
 0x10d   :  { %1275 = vmatpush1.bf16.msra.mxu0 %v1274_v35  ;;  %1387 = vmatpush1.bf16.msra.mxu1 %v1386_v36  ;;  %v920_v35 = vld [vmem:[%s2468_s7 + $0x38] sm:$0xff]  ;;  %v937_v36 = vld [vmem:[%s2468_s7 + $0xc0] sm:$0xff] }
 0x10e   :  { %1277 = vmatprep.subr.bf16.mxu0 %v1276_v41  ;;  %1389 = vmatprep.subr.bf16.mxu1 %v1388_v42  ;;  %v953_v41 = vld [vmem:[%s2468_s7 + $0x140] sm:$0xff]  ;;  %v1410_v42 = vpack.c.bf16 %v920_v35, %v919_v34  ;;  %v1412_v44 = vpack.c.bf16 %v938_v37, %v937_v36 }
 0x111   :  { %1279 = vmatpush1.bf16.msra.mxu0 %v1278_v49  ;;  %1391 = vmatpush1.bf16.msra.mxu1 %v1390_v50  ;;  %v1441_v49 = vpack.c.bf16 %v954_v43, %v953_v41  ;;  %v955_v50 = vld [vmem:[%s2468_s7 + $0x150] sm:$0xff] }
 0x112   :  { %1281 = vmatprep.subr.bf16.mxu0 %v1280_v53  ;;  %1393 = vmatprep.subr.bf16.mxu1 %v1392_v54  ;;  %v1416_v53 = vpack.c.bf16 %v940_v48, %v939_v47  ;;  %v923_v54 = vld [vmem:[%s2468_s7 + $0x50] sm:$0xff]  ;;  %v1444_v20 = vpack.c.bf16 %v956_v52, %v955_v50 }
 0x113   :  { %v1418_v58 = vpack.c.bf16 %v924_v55, %v923_v54 }
 0x115   :  { %1283 = vmatpush1.bf16.msra.mxu0 %v1282_v59  ;;  %1395 = vmatpush1.bf16.msra.mxu1 %v1394_v60  ;;  %v957_v59 = vld [vmem:[%s2468_s7 + $0x160] sm:$0xff]  ;;  %v958_v60 = vld [vmem:[%s2468_s7 + $0x168] sm:$0xff] }
 0x116   :  { %1428 = vmatprep.subr.bf16.mxu1 %v1481_v8  ;;  %1397 = vmatprep.subr.bf16.mxu0 %v1396_v0  ;;  %v1447_v62 = vpack.c.bf16 %v958_v60, %v957_v59  ;;  %v960_v0 = vld [vmem:[%s2468_s7 + $0x178] sm:$0xff] }
 0x117   :  { %v1450_v1 = vpack.c.bf16 %v960_v0, %v959_v63 }
 0x118   :  { %761 = vmatmul.mubr.f32.vlgmr.msra.gmra.mrb[4].mxu0 %v373_v7  ;;  %903 = vmatmul.mubr.f32.vlgmr.msra.gmra.mrb[0].mxu1 %v373_v7  ;;  %v925_v7 = vld [vmem:[%s2468_s7 + $0x60] sm:$0xff] }
 0x119   :  { %1430 = vmatpush1.bf16.msra.mxu1 %v1429_v4  ;;  %1399 = vmatpush3.bf16.msra.mxu0 %v1398_v6  ;;  %v963_v4 = vld [vmem:[%s2468_s7 + $0x190] sm:$0xff]  ;;  %v1422_v11 = vpack.c.bf16 %v926_v9, %v925_v7 }
 0x11a   :  { %1431 = vmatprep.subr.bf16.mxu1 %v1481_v8  ;;  %1401 = vmatprep.subr.bf16.mxu0 %v1400_v10  ;;  %v1456_v6 = vpack.c.bf16 %v964_v5, %v963_v4  ;;  %v965_v10 = vld [vmem:[%s2468_s7 + $0x1a0] sm:$0xff] }
 0x11b   :  { %v1459_v13 = vpack.c.bf16 %v966_v12, %v965_v10 }
 0x11d   :  { %1433 = vmatpush1.bf16.msra.mxu1 %v1432_v15  ;;  %1403 = vmatpush3.bf16.msra.mxu0 %v1402_v17  ;;  %v944_v15 = vld [vmem:[%s2468_s7 + $0xf8] sm:$0xff]  ;;  %v927_v17 = vld [vmem:[%s2468_s7 + $0x70] sm:$0xff] }
 0x11e   :  { %1434 = vmatprep.subr.bf16.mxu1 %v1481_v8  ;;  %1405 = vmatprep.subr.bf16.mxu0 %v1404_v23  ;;  %v1424_v16 = vpack.c.bf16 %v944_v15, %v943_v14  ;;  %v967_v23 = vld [vmem:[%s2468_s7 + $0x1b0] sm:$0xff]  ;;  %v1426_v25 = vpack.c.bf16 %v928_v22, %v927_v17 }
 0x11f   :  { %v1462_v27 = vpack.c.bf16 %v968_v26, %v967_v23 }
 0x121   :  { %1436 = vmatpush1.bf16.msra.mxu1 %v1435_v29  ;;  %1407 = vmatpush3.bf16.msra.mxu0 %v1406_v31  ;;  %v604_v29 = vrot.slane %v599_v28, %v349_v19  ;;  %v616_v31 = vrot.slane %v599_v28, %v361_v24  ;;  %v1135_v24 = vld [vmem:[%s2470_s8] ss:$0 sm:$0xff] }
 0x122   :  { %1437 = vmatprep.subr.bf16.mxu1 %v1481_v8  ;;  %1409 = vmatprep.subr.bf16.mxu0 %v1408_v33 }
 0x125   :  { %1439 = vmatpush1.bf16.msra.mxu1 %v1438_v38  ;;  %1411 = vmatpush3.bf16.msra.mxu0 %v1410_v42 }
 0x126   :  { %1440 = vmatprep.subr.bf16.mxu1 %v1481_v8  ;;  %1413 = vmatprep.subr.bf16.mxu0 %v1412_v44 }
 0x129   :  { %1442 = vmatpush1.bf16.msra.mxu1 %v1441_v49  ;;  %1415 = vmatpush3.bf16.msra.mxu0 %v1414_v51 }
 0x12a   :  { %1443 = vmatprep.subr.bf16.mxu1 %v1481_v8  ;;  %1417 = vmatprep.subr.bf16.mxu0 %v1416_v53 }
 0x12d   :  { %1445 = vmatpush1.bf16.msra.mxu1 %v1444_v20  ;;  %1419 = vmatpush3.bf16.msra.mxu0 %v1418_v58 }
 0x12e   :  { %1446 = vmatprep.subr.bf16.mxu1 %v1481_v8  ;;  %1421 = vmatprep.subr.bf16.mxu0 %v1420_v61 }
 0x131   :  { %1448 = vmatpush1.bf16.msra.mxu1 %v1447_v62  ;;  %1423 = vmatpush3.bf16.msra.mxu0 %v1422_v11 }
 0x132   :  { %1449 = vmatprep.subr.bf16.mxu1 %v1481_v8  ;;  %1425 = vmatprep.subr.bf16.mxu0 %v1424_v16 }
 0x135   :  { %1451 = vmatpush1.bf16.msra.mxu1 %v1450_v1  ;;  %1427 = vmatpush3.bf16.msra.mxu0 %v1426_v25 }
 0x136   :  { %1452 = vmatprep.subr.bf16.mxu1 %v1481_v8 }
 0x139   :  { %1454 = vmatpush1.bf16.msra.mxu1 %v1453_v39 }
 0x13a   :  { %1455 = vmatprep.subr.bf16.mxu1 %v1481_v8 }
 0x13d   :  { %1457 = vmatpush1.bf16.msra.mxu1 %v1456_v6 }
 0x13e   :  { %1458 = vmatprep.subr.bf16.mxu1 %v1481_v8 }
 0x141   :  { %1460 = vmatpush1.bf16.msra.mxu1 %v1459_v13 }
 0x142   :  { %1461 = vmatprep.subr.bf16.mxu1 %v1481_v8  ;;  %v608_v8 = vrot.slane %v599_v28, %v353_v21 }
 0x145   :  { %1463 = vmatpush1.bf16.msra.mxu1 %v1462_v27 }
 0x1eb   :  { %v762_v32 = vpop.f32.mrb[4].mxu0  ;;  %v904_v33 = vpop.f32.mrb[0].mxu1 }
 0x1ec   :  { %v1464_v34 = vadd.f32 %v762_v32, %v604_v29  ;;  %v1466_v35 = vadd.f32 %v904_v33, %v612_v30  ;;  %v764_v36 = vpop.f32.mrb[5].mxu0  ;;  %v906_v37 = vpop.f32.mrb[1].mxu1 }
 0x1ed   :  { %v1465_v38 = vadd.f32 %v764_v36, %v608_v8  ;;  %v1467_v41 = vadd.f32 %v906_v37, %v616_v31 }
 0x1ee   :  { %v909_v19 = vmax.f32 %v1464_v34, 0.0  ;;  %v911_v44 = vmax.f32 %v1466_v35, 0.0 }
 0x1ef   :  { %v910_v42 = vmax.f32 %v1465_v38, 0.0  ;;  %v912_v43 = vmax.f32 %v1467_v41, 0.0 }
 0x1f1   :  { %1043 = vmatprep.mubr.f32.mxu0 %v910_v42  ;;  %1136 = vmatprep.mubr.msk.f32.mxu1 %vm621_vm3, %v912_v43 }
 0x1f2   :  { %1044 = vmatmul.mubr.f32.vlgmr.msra.gmra.mrb[6].mxu0 %v909_v19  ;;  %1114 = vmatmul.mubr.f32.vlgmr.msra.gmra.mrb[2].mxu1 %v911_v44 }
 0x2c5   :  { %v1169_v21 = vpop.f32.mrb[6].mxu0  ;;  %v1115_v18 = vpop.f32.mrb[2].mxu1 }
 0x2c6   :  { %v1170_v40 = vpop.f32.mrb[7].mxu0  ;;  %v1117_v45 = vpop.f32.mrb[3].mxu1 }
 0x2c7   :  { %v1171_v46 = vadd.f32 %v1170_v40, %v1169_v21 }
 0x2c9   :  { %v1046_v47 = vadd.f32 %v1171_v46, %v1135_v24 }
 0x2cb   :  { %v1116_v48 = vadd.f32 %v1115_v18, %v1046_v47 }
 0x2cd   :  { %1120 = vst.msk [vmem:[%s2471_s9] sm:$0xff] %vm1119_vm4, %v1116_v48 }

</bundles_post_ra>
